<compile_context>
chip_gen: v7x
topology: tpu7x:2x2x1
jax: 0.10.0
libtpu: 0.0.40
codegen_flags: <defaults>
</compile_context>

<pallas_src>
import math

import jax
import jax.numpy as jnp
from jax.experimental import pallas as pl
from jax.experimental.pallas import tpu as pltpu

_EPS = 1e-9
_MAX_COLS = 1024                       # lane width of the flattened slab
_TARGET_BLOCK_BYTES = 4 * 1024 * 1024  # ~4 MiB per-array block
_VMEM_LIMIT_BYTES = 32 * 1024 * 1024   # 24 MiB double-buffered need + headroom


def _round_up(x, m):
    return ((x + m - 1) // m) * m


def _noisy_or_kernel(rgb_ref, d_ref, out_ref):
    rgb = rgb_ref[...]
    d = d_ref[...]
    # x = 1 - (1 - rgb) * (1 - d)  ==  rgb + d - rgb * d
    x = rgb + d - rgb * d
    # fp rounding of a + b - a*b can exceed 1.0; the PyTorch form is <= 1 exactly.
    x = jnp.minimum(x, jnp.asarray(1.0, x.dtype))
    x = jnp.maximum(x, jnp.asarray(_EPS, x.dtype))
    out_ref[...] = jnp.log(x).astype(out_ref.dtype)


def _choose_2d_layout(shape):
    """Pad-free (rows, cols) factorization of the element count.

    Prefers a lane-dense cols (largest multiple of 128 <= 1024 dividing the
    total).  Ragged totals (total % 128 != 0) keep the original trailing dim
    at full extent (also legal under the (8, 128) rule).
    """
    total = math.prod(shape)
    if total % 128 == 0:
        for cols in range(_MAX_COLS, 0, -128):
            if total % cols == 0:
                return total // cols, cols
    cols = shape[-1] if len(shape) >= 1 else 1
    return total // cols, cols


def _choose_block_rows(rows, cols, itemsize):
    """Pick the row-block size: ~4 MiB blocks, multiple of 8, balanced even grid."""
    target_rows = max(8, _TARGET_BLOCK_BYTES // max(1, cols * itemsize))
    target_rows = _round_up(target_rows, 8)
    n = pl.cdiv(rows, target_rows)
    # v7x megacore: >= 2 balanced (even-count) grid steps once the input is
    # big enough (~1 MiB/array) that per-step overhead is negligible.
    if rows * cols * itemsize >= (1 << 20):
        n = max(n, 2)
        if n % 2:
            n += 1
    block_rows = _round_up(pl.cdiv(rows, n), 8)
    return min(rows, block_rows)


def noisy_or(mean_rgb, mean_d):
    """NoisyOr fusion: log(clamp(1 - (1-p_rgb)*(1-p_d), 1e-9, 1)).

    Elementwise over arrays of any (matching) shape; returns same shape/dtype.
    """
    assert mean_rgb.shape == mean_d.shape
    orig_shape = mean_rgb.shape
    dtype = mean_rgb.dtype
    total = math.prod(orig_shape)
    itemsize = jnp.dtype(dtype).itemsize

    rows, cols = _choose_2d_layout(orig_shape)
    rgb2d = mean_rgb.reshape(rows, cols)
    d2d = mean_d.reshape(rows, cols)

    block_rows = _choose_block_rows(rows, cols, itemsize)
    grid = (pl.cdiv(rows, block_rows),)

    out2d = pl.pallas_call(
        _noisy_or_kernel,
        out_shape=jax.ShapeDtypeStruct((rows, cols), dtype),
        grid_spec=pltpu.PrefetchScalarGridSpec(
            num_scalar_prefetch=0,
            grid=grid,
            in_specs=[
                pl.BlockSpec((block_rows, cols), lambda i: (i, 0)),
                pl.BlockSpec((block_rows, cols), lambda i: (i, 0)),
            ],
            out_specs=pl.BlockSpec((block_rows, cols), lambda i: (i, 0)),
        ),
        compiler_params=pltpu.CompilerParams(
            dimension_semantics=("parallel",),
            vmem_limit_bytes=_VMEM_LIMIT_BYTES,
        ),
        cost_estimate=pl.CostEstimate(
            flops=4 * total,
            transcendentals=total,
            bytes_accessed=3 * total * itemsize,
        ),
    )(rgb2d, d2d)

    return out2d.reshape(orig_shape)


def noisy_or_ref(mean_rgb, mean_d):
    # Literal PyTorch-form reference.
    x = 1.0 - (1.0 - mean_rgb) * (1.0 - mean_d)
    x = jnp.where(x < _EPS, _EPS, x)
    return jnp.log(x)


if __name__ == "__main__":
    key = jax.random.PRNGKey(0)
    k_rgb, k_d = jax.random.split(key)

    B, C, H, W = 2, 4, 16, 16
    # Probability-like inputs in [0, 1), matching softmax-style mean maps.
    mean_rgb = jax.random.uniform(k_rgb, (B, C, H, W), dtype=jnp.float32)
    mean_d = jax.random.uniform(k_d, (B, C, H, W), dtype=jnp.float32)

    out = noisy_or(mean_rgb, mean_d)
    out = jax.block_until_ready(out)

    ref = noisy_or_ref(mean_rgb, mean_d)
    assert out.shape == (B, C, H, W)
    assert out.dtype == mean_rgb.dtype
    assert jnp.allclose(out, ref, atol=1e-4, rtol=1e-5), "mismatch vs reference"

    print("KERNEL_OK")
</pallas_src>

<mosaic_0001>
module attributes {stable_mosaic.version = 11 : i64} {
  func.func @_noisy_or_kernel(%arg0: i32, %arg1: memref<2x1024xf32, #tpu.memory_space<vmem>>, %arg2: memref<2x1024xf32, #tpu.memory_space<vmem>>, %arg3: memref<2x1024xf32, #tpu.memory_space<vmem>>) attributes {dimension_semantics = [#tpu.dimension_semantics<parallel>], iteration_bounds = array<i64: 1>, scalar_prefetch = 0 : i64, scratch_operands = 0 : i64, tpu.core_type = #tpu.core_type<tc>, window_params = [{transform_indices = @transform_0, window_bounds = array<i64: 2, 1024>}, {transform_indices = @transform_1, window_bounds = array<i64: 2, 1024>}, {transform_indices = @transform_2, window_bounds = array<i64: 2, 1024>}]} {
    %c0 = arith.constant 0 : index
    %c0_0 = arith.constant 0 : index
    %0 = vector.load %arg1[%c0, %c0_0] : memref<2x1024xf32, #tpu.memory_space<vmem>>, vector<2x1024xf32>
    %c0_1 = arith.constant 0 : index
    %c0_2 = arith.constant 0 : index
    %1 = vector.load %arg2[%c0_1, %c0_2] : memref<2x1024xf32, #tpu.memory_space<vmem>>, vector<2x1024xf32>
    %2 = arith.addf %0, %1 : vector<2x1024xf32>
    %3 = arith.mulf %0, %1 : vector<2x1024xf32>
    %4 = arith.subf %2, %3 : vector<2x1024xf32>
    %cst = arith.constant 1.000000e+00 : f32
    %5 = vector.broadcast %cst : f32 to vector<2x1024xf32>
    %6 = arith.minimumf %4, %5 : vector<2x1024xf32>
    %cst_3 = arith.constant 9.99999971E-10 : f32
    %7 = vector.broadcast %cst_3 : f32 to vector<2x1024xf32>
    %8 = arith.maximumf %6, %7 : vector<2x1024xf32>
    %9 = math.log %8 : vector<2x1024xf32>
    %c0_4 = arith.constant 0 : index
    %c0_5 = arith.constant 0 : index
    %10 = vector.load %arg3[%c0_4, %c0_5] : memref<2x1024xf32, #tpu.memory_space<vmem>>, vector<2x1024xf32>
    tpu.vector_store %arg3[%c0_4, %c0_5], %9 {strides = array<i32>} : memref<2x1024xf32, #tpu.memory_space<vmem>>, vector<2x1024xf32>,
    return
  }
  func.func @transform_0(%arg0: i32) -> (i32, i32) {
    %c0_i32 = arith.constant 0 : i32
    %c0_i32_0 = arith.constant 0 : i32
    return %arg0, %c0_i32 : i32, i32
  }
  func.func @transform_1(%arg0: i32) -> (i32, i32) {
    %c0_i32 = arith.constant 0 : i32
    %c0_i32_0 = arith.constant 0 : i32
    return %arg0, %c0_i32 : i32, i32
  }
  func.func @transform_2(%arg0: i32) -> (i32, i32) {
    %c0_i32 = arith.constant 0 : i32
    %c0_i32_0 = arith.constant 0 : i32
    return %arg0, %c0_i32 : i32, i32
  }
}

</mosaic_0001>

<bundles_post_ra>
// kernel: tpu_custom_call.1
= control target key start
LH: loop header
LB: loop body
LE: loop exit
PB: predicated region body
PF: predicated region fallthrough
CT: control target
= control target key end

     0   :  { %7 = vsyncpa [#allocation3], 0  ;;  %s205_s0 = inlined_call_operand.hbm [shape: f32[2,1024], index: 0, kind: input, shape index: {}]   ;;  %s206_s1 = inlined_call_operand.hbm [shape: f32[2,1024], index: 1, kind: input, shape index: {}]   ;;  %s207_s2 = inlined_call_operand.hbm [shape: f32[2,1024], index: 2, kind: output, shape index: {}]  }
   0x1   :  { %8 = vsyncpa [#allocation6], 0 }
   0x2   :  { %9 = vsyncpa [#allocation4], 0  ;;  %s151_s9 = smov [#allocation2]   ;;  %s152_s11 = smov [#allocation5]  }
   0x3   :  { %s16_s10 = sshll.u32 %s151_s9, 4  ;;  %s26_s12 = sshll.u32 %s152_s11, 4  ;;  %s17_s10 = int_to_ptr.vmem [resolvable:$true] %s16_s10  ;;  %s27_s12 = int_to_ptr.vmem [resolvable:$true] %s26_s12 }
   0x4   :  { %s79_s15 = scalar_lea.hbm %s205_s0, 256 }
   0x5   :  { %p80_p0 = scmp.ne.s32.totalorder %s205_s0, %s79_s15  ;;  %p83_p1 = scmp.lt.u32.totalorder %s79_s15, %s205_s0 }
   0x7   :  { %p85_p2 = pnand %p83_p1, %p80_p0 }
   0x9   :  { %88 = shalt.err (!%p85_p2)
}
   0xa   :  { %s89_s20 = scalar_lea.vmem %s17_s10, 256  ;;  %p94_p4 = scmp.lt.s32.totalorder %s17_s10, %s17_s10 }
   0xb   :  { %p90_p3 = scmp.ne.s32.totalorder %s17_s10, %s89_s20  ;;  %p95_p5 = scmp.lt.s32.totalorder %s89_s20, %s89_s20 }
   0xd   :  { %p96_p6 = por %p95_p5, %p94_p4 }
   0xf   :  { %p97_p7 = pnand %p96_p6, %p90_p3 }
  0x11   :  { %100 = shalt.err (!%p97_p7)
}
  0x12   :  { %19 = dma.hbm_to_vmem [thread:$0]  %s205_s0, 256, %s17_s10, [#allocation3]  }
  0x13   :  { %s101_s25 = scalar_lea.hbm %s206_s1, 256 }
  0x14   :  { %p102_p8 = scmp.ne.s32.totalorder %s206_s1, %s101_s25  ;;  %p105_p9 = scmp.lt.u32.totalorder %s101_s25, %s206_s1 }
  0x16   :  { %p107_p10 = pnand %p105_p9, %p102_p8 }
  0x18   :  { %110 = shalt.err (!%p107_p10)
}
  0x19   :  { %s111_s30 = scalar_lea.vmem %s27_s12, 256  ;;  %p116_p12 = scmp.lt.s32.totalorder %s27_s12, %s27_s12 }
  0x1a   :  { %p112_p11 = scmp.ne.s32.totalorder %s27_s12, %s111_s30  ;;  %p117_p13 = scmp.lt.s32.totalorder %s111_s30, %s111_s30 }
  0x1c   :  { %p118_p0 = por %p117_p13, %p116_p12 }
  0x1e   :  { %p119_p1 = pnand %p118_p0, %p112_p11 }
  0x20   :  { %122 = shalt.err (!%p119_p1)
}
  0x21   :  { %29 = dma.hbm_to_vmem [thread:$0]  %s206_s1, 256, %s27_s12, [#allocation6]  }
  0x22   :  { %145 = dma.done.wait [#allocation3], 256  }
  0x23   :  { %146 = vsyncadd [#allocation3], 4294967040 }
  0x24   :  { %147 = dma.done.wait [#allocation6], 256  }
  0x25   :  { %148 = vsyncadd [#allocation6], 4294967040  ;;  %v36_v0 = vld [vmem:[#allocation2] sm:$0xff]  ;;  %v38_v1 = vld [vmem:[#allocation5] sm:$0xff]  ;;  %s153_s1 = smov [#allocation7]  }
  0x26   :  { %v37_v2 = vld [vmem:[#allocation2 + $0x8] sm:$0xff]  ;;  %v40_v3 = vadd.f32 %v38_v1, %v36_v0  ;;  %v42_v4 = vmul.f32 %v38_v1, %v36_v0  ;;  %v39_v5 = vld [vmem:[#allocation5 + $0x8] sm:$0xff]  ;;  %s62_s4 = sshll.u32 %s153_s1, 4  ;;  %s63_s4 = int_to_ptr.vmem [resolvable:$true] %s62_s4 }
  0x27   :  { %v41_v6 = vadd.f32 %v39_v5, %v37_v2  ;;  %v43_v7 = vmul.f32 %v39_v5, %v37_v2  ;;  %s123_s5 = scalar_lea.vmem %s63_s4, 256  ;;  %p128_p3 = scmp.lt.s32.totalorder %s63_s4, %s63_s4 }
  0x28   :  { %v44_v8 = vsub.f32 %v40_v3, %v42_v4  ;;  %p124_p2 = scmp.ne.s32.totalorder %s63_s4, %s123_s5  ;;  %p129_p4 = scmp.lt.s32.totalorder %s123_s5, %s123_s5 }
  0x29   :  { %v45_v9 = vsub.f32 %v41_v6, %v43_v7 }
  0x2a   :  { %v46_v10 = vmin.f32 %v44_v8, 1.0  ;;  %p130_p5 = por %p129_p4, %p128_p3 }
  0x2b   :  { %v47_v11 = vmin.f32 %v45_v9, 1.0 }
  0x2c   :  { %v48_v12 = vmax.f32 %v46_v10, 1e-09  ;;  %p131_p6 = pnand %p130_p5, %p124_p2 }
  0x2d   :  { %v49_v13 = vmax.f32 %v47_v11, 1e-09 }
  0x2e   :  { %75 = vlog2.f32 %v48_v12 }
  0x2f   :  { %77 = vlog2.f32 %v49_v13 }
  0x38   :  { %v76_v14 = vpop.eup %75 }
  0x39   :  { %v78_v15 = vpop.eup %77  ;;  %v51_v16 = vmul.f32 0.6931472, %v76_v14 }
  0x3a   :  { %v53_v17 = vmul.f32 0.6931472, %v78_v15 }
  0x3b   :  { %54 = vst [vmem:[#allocation7] sm:$0xff] %v51_v16 }
  0x3c   :  { %55 = vst [vmem:[#allocation7 + $0x8] sm:$0xff] %v53_v17 }
  0x3d   :  { %134 = shalt.err (!%p131_p6)
}
  0x3e   :  { %s135_s8 = scalar_lea.hbm %s207_s2, 256 }
  0x3f   :  { %p136_p7 = scmp.ne.s32.totalorder %s207_s2, %s135_s8  ;;  %p139_p8 = scmp.lt.u32.totalorder %s135_s8, %s207_s2 }
  0x41   :  { %p141_p9 = pnand %p139_p8, %p136_p7 }
  0x43   :  { %144 = shalt.err (!%p141_p9)
}
  0x44   :  { %65 = dma.vmem_to_hbm [thread:$0]  %s63_s4, 256, %s207_s2, [#allocation4]  }
  0x45   :  { %149 = dma.done.wait [#allocation4], 256  }
  0x46   :  { %150 = vsyncadd [#allocation4], 4294967040 }
  0x47   :  { %69 = vsyncpa [#allocation3], 1 }
  0x48   :  { %70 = vsyncpa [#allocation6], 1 }
  0x49   :  { %71 = vsyncpa [#allocation4], 1 }

</bundles_post_ra>
